<compile_context>
chip_gen: v7x
topology: tpu7x:2x2x1
jax: 0.10.0
libtpu: 0.0.40
codegen_flags: <defaults>
</compile_context>

<pallas_src>
import jax
import jax.numpy as jnp
from jax.experimental import pallas as pl
from jax.experimental.pallas import tpu as pltpu

EPS = 1e-5  # torch.nn.LayerNorm default


def _round_up(v, m):
    return -(-v // m) * m


def _vmem_budgets():
    """(vmem_limit_bytes, tile-picking budget) sized for the current chip."""
    phys = 64 * 1024 * 1024            # conservative default = v7x per-core VMEM
    try:
        phys = int(pltpu.get_tpu_info().vmem_capacity_bytes)
    except Exception:
        pass
    limit = (phys * 3) // 4            # ~48 MiB on v7x, ~96 MiB on v5e/v6e
    budget = limit - 8 * 1024 * 1024   # headroom for compiler temporaries
    return limit, budget


def _pick_tm(m, per_row_bytes, budget_bytes):
    """Largest row tile from a ladder that fits the budget, capped so the grid
    keeps >= ~4 steps (pipelining; >=2 steps/TensorCore on v7x megacore)."""
    cap = max(8, _round_up(pl.cdiv(m, 4), 8))
    for tm in (1024, 512, 256, 128, 64, 32, 16, 8):
        if tm <= cap and tm * per_row_bytes <= budget_bytes:
            return tm
    return 8


def _make_fused_kernel(true_d):
    inv_d = 1.0 / float(true_d)

    def kernel(x_ref, gamma_ref, beta_ref, w_ref, b_ref, o_ref):
        x = x_ref[...].astype(jnp.float32)
        # Two-pass LayerNorm statistics (more robust than E[x^2]-mean^2).
        mean = jnp.sum(x, axis=-1, keepdims=True) * inv_d
        xc = x - mean
        var = jnp.sum(xc * xc, axis=-1, keepdims=True) * inv_d
        inv = jax.lax.rsqrt(var + EPS)
        normed = xc * inv * gamma_ref[...] + beta_ref[...]
        # fn: Linear(D, D) on the MXU, f32 accumulation.
        y = jnp.dot(normed.astype(w_ref.dtype), w_ref[...],
                    preferred_element_type=jnp.float32)
        o_ref[...] = (y + b_ref[...]).astype(o_ref.dtype)

    return kernel


def _make_tiled_kernel(true_d):
    inv_d = 1.0 / float(true_d)

    def kernel(x_ref, gamma_ref, beta_ref, w_ref, b_ref, o_ref, normed_ref):
        # LayerNorm once per row tile (j == 0); reuse across weight-column tiles.
        @pl.when(pl.program_id(1) == 0)
        def _():
            x = x_ref[...].astype(jnp.float32)
            mean = jnp.sum(x, axis=-1, keepdims=True) * inv_d
            xc = x - mean
            var = jnp.sum(xc * xc, axis=-1, keepdims=True) * inv_d
            inv = jax.lax.rsqrt(var + EPS)
            normed_ref[...] = (xc * inv * gamma_ref[...]
                               + beta_ref[...]).astype(normed_ref.dtype)

        y = jnp.dot(normed_ref[...], w_ref[...],
                    preferred_element_type=jnp.float32)
        o_ref[...] = (y + b_ref[...]).astype(o_ref.dtype)

    return kernel


def prenorm(x, gamma, beta, w, b, *, matmul_dtype=None):
    """x: (B, N, D). Returns fn(LayerNorm(x)) with fn = Linear(D, D): y @ w + b."""
    B, N, D = x.shape
    M = B * N

    x2 = x.reshape(M, D)                                  # view, no HBM copy
    gamma2 = gamma.astype(jnp.float32).reshape(1, D)
    beta2 = beta.astype(jnp.float32).reshape(1, D)
    b2 = b.astype(jnp.float32).reshape(1, D)
    # Optionally run the MXU in bf16 (with f32 accumulation) for f32 models;
    # biggest win on v5e for MXU-bound large-D cases.
    w2 = w if matmul_dtype is None else w.astype(matmul_dtype)

    in_bytes = jnp.dtype(x.dtype).itemsize
    out_bytes = in_bytes
    w_bytes = jnp.dtype(w2.dtype).itemsize

    vmem_limit, budget = _vmem_budgets()
    weight_foot = D * D * w_bytes                         # single-buffered

    # -------- path selection --------
    # x + out double-buffered, plus f32 temporaries inside the kernel.
    per_row_small = D * (2 * in_bytes + 2 * out_bytes + 4 * 4)
    small_min_rows = min(256, _round_up(M, 8))
    use_small = (weight_foot <= budget // 2 and
                 weight_foot + small_min_rows * per_row_small <= budget)

    if use_small:
        TM = _pick_tm(M, per_row_small, budget - weight_foot)
        grid = (pl.cdiv(M, TM),)
        kernel = _make_fused_kernel(D)
        in_specs = [
            pl.BlockSpec((TM, D), lambda i: (i, 0)),                          # x
            pl.BlockSpec((1, D), lambda i: (0, 0), pipeline_mode=pl.Buffered(1)),
            pl.BlockSpec((1, D), lambda i: (0, 0), pipeline_mode=pl.Buffered(1)),
            pl.BlockSpec((D, D), lambda i: (0, 0), pipeline_mode=pl.Buffered(1)),
            pl.BlockSpec((1, D), lambda i: (0, 0), pipeline_mode=pl.Buffered(1)),
        ]
        out_specs = pl.BlockSpec((TM, D), lambda i: (i, 0))
        scratch = []
        semantics = ("parallel",)
    else:
        # Tile the weight's output dimension (multiple of 256 for v6e/v7x MXU).
        TN = D
        for cand in (512, 256, 128):
            if cand < D and 2 * D * cand * w_bytes <= budget // 2:
                TN = cand
                break
        per_row_big = D * (2 * in_bytes + w_bytes + 3 * 4) + TN * 2 * out_bytes
        fixed_big = 2 * D * TN * w_bytes
        TM = _pick_tm(M, per_row_big, budget - fixed_big)
        grid = (pl.cdiv(M, TM), pl.cdiv(D, TN))
        kernel = _make_tiled_kernel(D)
        in_specs = [
            pl.BlockSpec((TM, D), lambda i, j: (i, 0)),   # x (re-DMA'd only when i changes)
            pl.BlockSpec((1, D), lambda i, j: (0, 0), pipeline_mode=pl.Buffered(1)),
            pl.BlockSpec((1, D), lambda i, j: (0, 0), pipeline_mode=pl.Buffered(1)),
            pl.BlockSpec((D, TN), lambda i, j: (0, j)),   # weight column block
            pl.BlockSpec((1, TN), lambda i, j: (0, j)),   # bias block
        ]
        out_specs = pl.BlockSpec((TM, TN), lambda i, j: (i, j))
        scratch = [pltpu.VMEM((TM, D), w2.dtype)]         # normalized row tile
        semantics = ("parallel", "arbitrary")
        # TODO(synk): for weights too large even for a (D, TN) column block
        # (e.g. f32 D >= ~16K under v7x's 64 MiB VMEM), additionally tile the
        # contraction dimension with an f32 VMEM accumulator.

    out = pl.pallas_call(
        kernel,
        out_shape=jax.ShapeDtypeStruct((M, D), x.dtype),
        grid_spec=pltpu.PrefetchScalarGridSpec(
            num_scalar_prefetch=0,
            grid=grid,
            in_specs=in_specs,
            out_specs=out_specs,
            scratch_shapes=scratch),
        compiler_params=pltpu.CompilerParams(
            dimension_semantics=semantics,
            vmem_limit_bytes=vmem_limit),
    )(x2, gamma2, beta2, w2, b2)

    return out.reshape(B, N, D)


if __name__ == "__main__":
    B, N, D = 2, 8, 32  # small shapes: batch=2, seq=8, hidden=32

    key = jax.random.PRNGKey(0)
    kx, kw, kb = jax.random.split(key, 3)

    x = jax.random.normal(kx, (B, N, D), dtype=jnp.float32)

    # PreNorm's own parameters: nn.LayerNorm(dim) default init
    gamma = jnp.ones((D,), jnp.float32)
    beta = jnp.zeros((D,), jnp.float32)

    # fn's parameters (deterministic, synthetic): Linear(D, D)
    w = jax.random.normal(kw, (D, D), dtype=jnp.float32) * (1.0 / D ** 0.5)
    b = jax.random.normal(kb, (D,), dtype=jnp.float32) * 0.01

    out = prenorm(x, gamma, beta, w, b)
    out = jax.block_until_ready(out)

    # sanity check against plain-JAX reference
    mean = jnp.mean(x, axis=-1, keepdims=True)
    var = jnp.mean((x - mean) ** 2, axis=-1, keepdims=True)
    normed = (x - mean) / jnp.sqrt(var + EPS) * gamma + beta
    ref = normed @ w + b
    assert jnp.allclose(out, ref, atol=2e-4, rtol=2e-4), "mismatch vs reference"

    print("KERNEL_OK")
</pallas_src>

<mosaic_0001>
module attributes {stable_mosaic.version = 11 : i64} {
  func.func @kernel(%arg0: i32, %arg1: memref<8x32xf32, #tpu.memory_space<vmem>>, %arg2: memref<1x32xf32, #tpu.memory_space<vmem>>, %arg3: memref<1x32xf32, #tpu.memory_space<vmem>>, %arg4: memref<32x32xf32, #tpu.memory_space<vmem>>, %arg5: memref<1x32xf32, #tpu.memory_space<vmem>>, %arg6: memref<8x32xf32, #tpu.memory_space<vmem>>) attributes {dimension_semantics = [#tpu.dimension_semantics<parallel>], iteration_bounds = array<i64: 2>, scalar_prefetch = 0 : i64, scratch_operands = 0 : i64, tpu.core_type = #tpu.core_type<tc>, window_params = [{transform_indices = @transform_0, window_bounds = array<i64: 8, 32>}, {pipeline_mode = #tpu.pipeline_mode<synchronous>, transform_indices = @transform_1, window_bounds = array<i64: 1, 32>}, {pipeline_mode = #tpu.pipeline_mode<synchronous>, transform_indices = @transform_2, window_bounds = array<i64: 1, 32>}, {pipeline_mode = #tpu.pipeline_mode<synchronous>, transform_indices = @transform_3, window_bounds = array<i64: 32, 32>}, {pipeline_mode = #tpu.pipeline_mode<synchronous>, transform_indices = @transform_4, window_bounds = array<i64: 1, 32>}, {transform_indices = @transform_5, window_bounds = array<i64: 8, 32>}]} {
    %c0 = arith.constant 0 : index
    %c0_0 = arith.constant 0 : index
    %0 = vector.load %arg1[%c0, %c0_0] : memref<8x32xf32, #tpu.memory_space<vmem>>, vector<8x32xf32>
    %cst = arith.constant dense<0.000000e+00> : vector<8xf32>
    %1 = vector.multi_reduction <add>, %0, %cst [1] : vector<8x32xf32> to vector<8xf32>
    %2 = vector.shape_cast %1 : vector<8xf32> to vector<8x1xf32>
    %cst_1 = arith.constant 3.125000e-02 : f32
    %3 = vector.broadcast %cst_1 : f32 to vector<8x1xf32>
    %4 = arith.mulf %2, %3 : vector<8x1xf32>
    %5 = vector.broadcast %4 : vector<8x1xf32> to vector<8x32xf32>
    %6 = arith.subf %0, %5 : vector<8x32xf32>
    %7 = arith.mulf %6, %6 : vector<8x32xf32>
    %cst_2 = arith.constant dense<0.000000e+00> : vector<8xf32>
    %8 = vector.multi_reduction <add>, %7, %cst_2 [1] : vector<8x32xf32> to vector<8xf32>
    %9 = vector.shape_cast %8 : vector<8xf32> to vector<8x1xf32>
    %cst_3 = arith.constant 3.125000e-02 : f32
    %10 = vector.broadcast %cst_3 : f32 to vector<8x1xf32>
    %11 = arith.mulf %9, %10 : vector<8x1xf32>
    %cst_4 = arith.constant 9.99999974E-6 : f32
    %12 = vector.broadcast %cst_4 : f32 to vector<8x1xf32>
    %13 = arith.addf %11, %12 : vector<8x1xf32>
    %14 = math.rsqrt %13 : vector<8x1xf32>
    %15 = vector.broadcast %14 : vector<8x1xf32> to vector<8x32xf32>
    %16 = arith.mulf %6, %15 : vector<8x32xf32>
    %c0_5 = arith.constant 0 : index
    %c0_6 = arith.constant 0 : index
    %17 = vector.load %arg2[%c0_5, %c0_6] : memref<1x32xf32, #tpu.memory_space<vmem>>, vector<1x32xf32>
    %18 = vector.broadcast %17 : vector<1x32xf32> to vector<8x32xf32>
    %19 = arith.mulf %16, %18 : vector<8x32xf32>
    %c0_7 = arith.constant 0 : index
    %c0_8 = arith.constant 0 : index
    %20 = vector.load %arg3[%c0_7, %c0_8] : memref<1x32xf32, #tpu.memory_space<vmem>>, vector<1x32xf32>
    %21 = vector.broadcast %20 : vector<1x32xf32> to vector<8x32xf32>
    %22 = arith.addf %19, %21 : vector<8x32xf32>
    %c0_9 = arith.constant 0 : index
    %c0_10 = arith.constant 0 : index
    %23 = vector.load %arg4[%c0_9, %c0_10] : memref<32x32xf32, #tpu.memory_space<vmem>>, vector<32x32xf32>
    %cst_11 = arith.constant dense<0.000000e+00> : vector<8x32xf32>
    %24 = tpu.matmul %22, %23, %cst_11 {dimension_numbers = #tpu.dot_dimension_numbers<[1], [0], [0], [1], [0, 0, 1, 1], [], []>} : vector<8x32xf32>, vector<32x32xf32>, vector<8x32xf32> -> vector<8x32xf32>
    %c0_12 = arith.constant 0 : index
    %c0_13 = arith.constant 0 : index
    %25 = vector.load %arg5[%c0_12, %c0_13] : memref<1x32xf32, #tpu.memory_space<vmem>>, vector<1x32xf32>
    %26 = vector.broadcast %25 : vector<1x32xf32> to vector<8x32xf32>
    %27 = arith.addf %24, %26 : vector<8x32xf32>
    %c0_14 = arith.constant 0 : index
    %c0_15 = arith.constant 0 : index
    %28 = vector.load %arg6[%c0_14, %c0_15] : memref<8x32xf32, #tpu.memory_space<vmem>>, vector<8x32xf32>
    tpu.vector_store %arg6[%c0_14, %c0_15], %27 {strides = array<i32>} : memref<8x32xf32, #tpu.memory_space<vmem>>, vector<8x32xf32>,
    return
  }
  func.func @transform_0(%arg0: i32) -> (i32, i32) {
    %c0_i32 = arith.constant 0 : i32
    %c0_i32_0 = arith.constant 0 : i32
    return %arg0, %c0_i32 : i32, i32
  }
  func.func @transform_1(%arg0: i32) -> (i32, i32) {
    %c0_i32 = arith.constant 0 : i32
    %c0_i32_0 = arith.constant 0 : i32
    %c0_i32_1 = arith.constant 0 : i32
    return %c0_i32, %c0_i32_0 : i32, i32
  }
  func.func @transform_2(%arg0: i32) -> (i32, i32) {
    %c0_i32 = arith.constant 0 : i32
    %c0_i32_0 = arith.constant 0 : i32
    %c0_i32_1 = arith.constant 0 : i32
    return %c0_i32, %c0_i32_0 : i32, i32
  }
  func.func @transform_3(%arg0: i32) -> (i32, i32) {
    %c0_i32 = arith.constant 0 : i32
    %c0_i32_0 = arith.constant 0 : i32
    %c0_i32_1 = arith.constant 0 : i32
    return %c0_i32, %c0_i32_0 : i32, i32
  }
  func.func @transform_4(%arg0: i32) -> (i32, i32) {
    %c0_i32 = arith.constant 0 : i32
    %c0_i32_0 = arith.constant 0 : i32
    %c0_i32_1 = arith.constant 0 : i32
    return %c0_i32, %c0_i32_0 : i32, i32
  }
  func.func @transform_5(%arg0: i32) -> (i32, i32) {
    %c0_i32 = arith.constant 0 : i32
    %c0_i32_0 = arith.constant 0 : i32
    return %arg0, %c0_i32 : i32, i32
  }
}

</mosaic_0001>

<bundles_post_ra>
// kernel: tpu_custom_call.1
= control target key start
LH: loop header
LB: loop body
LE: loop exit
PB: predicated region body
PF: predicated region fallthrough
CT: control target
= control target key end

     0   :  { %10 = vsyncpa [#allocation3], 0  ;;  %s950_s0 = inlined_call_operand.hbm [shape: f32[16,32], index: 0, kind: input, shape index: {}]   ;;  %s951_s1 = inlined_call_operand.vmem [shape: f32[1,32], index: 1, kind: input, shape index: {}]   ;;  %s952_s2 = inlined_call_operand.vmem [shape: f32[1,32], index: 2, kind: input, shape index: {}]   ;;  %s953_s3 = inlined_call_operand.hbm [shape: f32[32,32], index: 3, kind: input, shape index: {}]   ;;  %s954_s4 = inlined_call_operand.vmem [shape: f32[1,32], index: 4, kind: input, shape index: {}]   ;;  %s955_s5 = inlined_call_operand.hbm [shape: f32[16,32], index: 5, kind: output, shape index: {}]  }
   0x1   :  { %12 = vsyncpa [#allocation3 + $0x1], 0 }
   0x2   :  { %13 = vsyncpa [#allocation6], 0 }
   0x3   :  { %14 = vsyncpa [#allocation4], 0 }
   0x4   :  { %16 = vsyncpa [#allocation4 + $0x1], 0  ;;  %s737_s18 = smov 0   ;;  %s739_s19 = smov 0  }
   0x5   :  { %s741_s20 = smov 0   ;;  %s743_s21 = smov 0  }
   0x6 LB: > { %s758_s22 = sadd.s32 4294967295, %s697_s21   ;;  %s465_s23 = sadd.s32 4294967294, %s697_s21   ;;  %s697_s21 = sphi %s743_s21, %s975_s21   ;;  %s693_s20 = sphi %s741_s20, %s974_s20   ;;  %s689_s19 = sphi %s739_s19, %s973_s19   ;;  %s685_s18 = sphi %s737_s18, %s972_s18  }
   0x7   : > { %p42_p0 = scmp.ne.s32.totalorder %s689_s19, %s685_s18  ;;  %p956_p1 = scmp.eq.s32.totalorder %s758_s22, 0 }
   0x8   : > { %p156_p3 = scmp.eq.s32.totalorder %s465_s23, 1  ;;  %p466_p5 = scmp.ge.s32.totalorder %s697_s21, 1 }
   0x9   : > { %p767_p4 = por %p956_p1, %p42_p0  ;;  %p163_p7 = scmp.lt.s32.totalorder %s697_s21, 3 }
   0xa   : > { %p772_p6 = por %p156_p3, %p42_p0  ;;  %s699_s27 = smov [#allocation5]  }
   0xb   : > { %s959_s24 = scalar_select %p767_p4, 1, 0 }
   0xc   : > { %s960_s25 = scalar_select %p772_p6, 1, 0 }
   0xd   : > { %p777_p8 = pnand %p466_p5, %p163_p7  ;;  %s181_s28 = sshll.u32 %s699_s27, 4  ;;  %s781_s28 = int_to_ptr.vmem [resolvable:$true] %s181_s28 }
   0xe   : > { %s793_s30 = sadd.s32 1, %s697_s21   ;;  %s29_s6 = sadd.s32 1, %s693_s20 }
   0xf   : > { %s961_s26 = scalar_select %p777_p8, 1, 0 }
  0x10   : > { %p513_p9 = pneg %p777_p8  ;;  %s26_s7 = ssub.s32 %s697_s21, %s793_s30 }
  0x11   : > { %s569_s10 = scalar_lea.hbm %s953_s3, 512 }
  0x12   : > { %p788_p11 = pnand %p513_p9, %p956_p1  ;;  %p570_p12 = scmp.ne.s32.totalorder %s953_s3, %s569_s10 }
  0x13   : > { %p576_p5 = scmp.lt.u32.totalorder %s569_s10, %s953_s3 }
  0x14   : > { %p571_p13 = pneg %p788_p11 }
  0x16   : > { %p572_p0 = pnand %p571_p13, %p570_p12 }
  0x18   : > { %p573_p3 = pneg %p572_p0 }
  0x1a   : > { %p578_p7 = pnand %p576_p5, %p573_p3 }
  0x1c   : > { %581 = shalt.err (!%p578_p7)
}
  0x1d   : > { %s582_s15 = scalar_lea.vmem %s781_s28, 512  ;;  %p590_p2 = scmp.lt.s32.totalorder %s781_s28, %s781_s28 }
  0x1e   : > { %p583_p9 = scmp.ne.s32.totalorder %s781_s28, %s582_s15  ;;  %p591_p6 = scmp.lt.s32.totalorder %s582_s15, %s582_s15 }
  0x20   : > { %p585_p10 = pnand %p583_p9, %p571_p13  ;;  %p592_p4 = por %p591_p6, %p590_p2 }
  0x22   : > { %p586_p1 = pneg %p585_p10 }
  0x24   : > { %p593_p8 = pnand %p592_p4, %p586_p1 }
  0x26   : > { %596 = shalt.err (!%p593_p8)
}
  0x27   : > { %s700_s16 = smov 128   ;;  %s701_s17 = smov 8  }
  0x28   : > { %516 = dma.hbm_to_vmem [thread:$0]  (!%p788_p11), %s953_s3, 512, %s781_s28, [#allocation6], %s700_s16, %s700_s16, %s701_s17  }
  0x29   : > { %p27_p2 = scmp.eq.s32.totalorder %s26_s7, 0  ;;  %p36_p1 = scmp.ne.s32.totalorder %s693_s20, %s689_s19 }
  0x2a   : > { %p37_p4 = scmp.eq.s32.totalorder %s697_s21, 0  ;;  %p526_p6 = scmp.lt.s32.totalorder %s697_s21, 2 }
  0x2b   : > { %s824_s8 = scalar_select %p27_p2, %s693_s20, %s29_s6  }
  0x2c   : > { %p38_p8 = por %p37_p4, %p36_p1  ;;  %p963_p10 = scmp.eq.s32.totalorder %s758_s22, 1 }
  0x2d   : > { %s198_s10 = sand.u32 1, %s693_s20   ;;  %s470_s11 = sshll.u32 %s697_s21, 7 }
  0x2e   : > { %p828_p12 = por %p963_p10, %p36_p1  ;;  %s469_s12 = sshll.u32 %s198_s10, 3 }
  0x2f   : > { %s837_s14 = scalar_lea.hbm %s950_s0, %s470_s11  ;;  %s202_s28 = scalar_lea.vmem [#allocation2], %s469_s12 }
  0x30   : > { %s209_s6 = sshll.u32 %s202_s28, 4  ;;  %p839_p11 = pnand %p526_p6, %p38_p8  ;;  %s843_s6 = int_to_ptr.vmem [resolvable:$true] %s209_s6 }
  0x31   : > { %s199_s15 = scalar_lea.sflag [#allocation3], %s198_s10  ;;  %s597_s16 = scalar_lea.hbm %s837_s14, 128 }
  0x32   : > { %p598_p13 = scmp.ne.s32.totalorder %s837_s14, %s597_s16  ;;  %p599_p0 = pneg %p839_p11 }
  0x33   : > { %s602_s27 = scalar_lea.hbm %s950_s0, 256  ;;  %p603_p7 = scmp.lt.u32.totalorder %s837_s14, %s950_s0 }
  0x34   : > { %p600_p3 = pnand %p599_p0, %p598_p13  ;;  %p604_p9 = scmp.lt.u32.totalorder %s602_s27, %s597_s16 }
  0x35   : > { %p606_p1 = scmp.lt.u32.totalorder %s597_s16, %s837_s14 }
  0x36   : > { %p601_p5 = pneg %p600_p3  ;;  %p605_p2 = por %p604_p9, %p603_p7 }
  0x38   : > { %p607_p4 = por %p606_p1, %p605_p2 }
  0x3a   : > { %p608_p6 = pnand %p607_p4, %p601_p5 }
  0x3c   : > { %611 = shalt.err (!%p608_p6)
}
  0x3d   : > { %s612_s10 = scalar_lea.vmem %s843_s6, 128  ;;  %s702_s29 = smov [#allocation2]  }
  0x3e   : > { %p613_p8 = scmp.ne.s32.totalorder %s843_s6, %s612_s10  ;;  %s617_s13 = sshll.u32 %s702_s29, 4  ;;  %s618_s13 = int_to_ptr.vmem [resolvable:$false] %s617_s13 }
  0x3f   : > { %s619_s28 = scalar_lea.vmem %s618_s13, 256  ;;  %p620_p3 = scmp.lt.s32.totalorder %s843_s6, %s618_s13 }
  0x40   : > { %p615_p10 = pnand %p613_p8, %p599_p0  ;;  %p621_p7 = scmp.lt.s32.totalorder %s619_s28, %s612_s10 }
  0x42   : > { %p616_p13 = pneg %p615_p10  ;;  %p622_p9 = por %p621_p7, %p620_p3 }
  0x44   : > { %p623_p2 = pnand %p622_p9, %p616_p13 }
  0x46   : > { %626 = shalt.err (!%p623_p2)
}
  0x47   : > { %520 = dma.hbm_to_vmem [thread:$0]  (!%p839_p11), %s837_s14, 128, %s843_s6, %s199_s15  }
  0x48   : > { %p966_p5 = scmp.ne.s32.totalorder %s961_s26, 0 }
  0x49   : > { %s873_s16 = sand.u32 (!%p966_p5), 1, %s689_s19   ;;  %p967_p0 = scmp.ne.s32.totalorder (!%p966_p5), %s959_s24, 0 }
  0x4a   : > { %218 = sbr.rel (%p966_p5) target bundleno = 627 (0x273), region = 40  ;;  %s472_s17 = sshll.u32 (!%p966_p5), %s873_s16, 3 }
  0x4b   : > { %s221_s23 = scalar_lea.sflag (!%p966_p5), [#allocation3], %s873_s16  ;;  %s224_s27 = scalar_lea.vmem (!%p966_p5), [#allocation2], %s472_s17 }
  0x51   : > { %672 = dma.done.wait (%p967_p0), %s221_s23, 128  }
  0x52   : > { %674 = vsyncadd (%p967_p0), %s221_s23, 4294967168  ;;  %p968_p11 = scmp.eq.s32.totalorder %s758_s22, 0 }
  0x54   : > { %676 = dma.done.wait (%p968_p11), [#allocation6], 512   ;;  %p969_p1 = pmov %p968_p11 }
  0x55   : > { %vm256_vm0 = vcmask 261120   ;;  %v255_v0 = vld [vmem:[%s224_s27] sm:$0xff]  ;;  %v286_v7 = vld [vmem:[#allocation5] sm:$0xff]  ;;  %v287_v8 = vld [vmem:[#allocation5 + $0x8] sm:$0xff]  ;;  %v703_v10 = vmov 0.0|0.0   ;;  %vm704_vm1 = vmmov 0  }
  0x56   : > { %678 = vsyncadd (%p969_p1), [#allocation6], 4294966784  ;;  %v257_v1 = vsel %vm256_vm0, %v255_v0, 0.0  ;;  %v288_v9 = vld [vmem:[#allocation5 + $0x10] sm:$0xff]  ;;  %499 = vmatprep.subr.bf16.mxu0 %v703_v10  ;;  %v500_v11 = vpack.c.bf16 %v287_v8, %v286_v7  ;;  %v289_v12 = vld [vmem:[#allocation5 + $0x18] sm:$0xff]  ;;  %v705_v13 = vmov 0.0  }
  0x57   : > { %258 = vadd.xlane.f32.xlu0 %v257_v1  ;;  %496 = vmatprep.mubr.msk.f32.mxu0 %vm704_vm1, %v705_v13  ;;  %v503_v14 = vpack.c.bf16 %v289_v12, %v288_v9  ;;  %v475_v19 = vld [vmem:[%s951_s1] ss:$0 sm:$0xff]  ;;  %s480_s11 = sshll.u32 %s758_s22, 7  ;;  %s254_s12 = scalar_lea.vmem [#allocation7], %s472_s17 }
  0x58   : > { %501 = vmatpush3.bf16.msra.mxu0 %v500_v11  ;;  %v476_v21 = vld [vmem:[%s952_s2] ss:$0 sm:$0xff]  ;;  %s385_s10 = sshll.u32 %s254_s12, 4  ;;  %s905_s28 = scalar_lea.hbm %s955_s5, %s480_s11  ;;  %s907_s10 = int_to_ptr.vmem [resolvable:$true] %s385_s10 }
  0x59   : > { %502 = vmatprep.subr.bf16.mxu0 %v703_v10  ;;  %v477_v24 = vld [vmem:[%s954_s4] ss:$0 sm:$0xff]  ;;  %s372_s23 = scalar_lea.sflag [#allocation4], %s873_s16  ;;  %s627_s22 = scalar_lea.vmem %s907_s10, 128 }
  0x5a   : > { %p628_p4 = scmp.ne.s32.totalorder %s907_s10, %s627_s22  ;;  %s706_s17 = smov [#allocation7]  }
  0x5b   : > { %s631_s27 = sshll.u32 %s706_s17, 4  ;;  %s632_s27 = int_to_ptr.vmem [resolvable:$false] %s631_s27 }
  0x5c   : > { %504 = vmatpush3.bf16.msra.mxu0 %v503_v14  ;;  %p629_p6 = pnand %p628_p4, %p828_p12  ;;  %s633_s24 = scalar_lea.vmem %s632_s27, 256 }
  0x5d   : > { %p634_p10 = scmp.lt.s32.totalorder %s907_s10, %s632_s27  ;;  %p635_p13 = scmp.lt.s32.totalorder %s633_s24, %s627_s22 }
  0x5e   : > { %p630_p8 = pneg %p629_p6 }
  0x5f   : > { %p636_p3 = por %p635_p13, %p634_p10 }
  0x61   : > { %p637_p7 = pnand %p636_p3, %p630_p8 }
  0xe4   : > { %v259_v2 = vpop.xlane.xlu0 %258 }
  0xe5   : > { %v260_v3 = vmul.f32 0.03125, %v259_v2 }
  0xe7   : > { %v261_v4 = vsub.f32 %v255_v0, %v260_v3 }
  0xe9   : > { %v262_v5 = vmul.f32 %v261_v4, %v261_v4 }
  0xeb   : > { %v263_v6 = vsel %vm256_vm0, %v262_v5, 0.0 }
  0xec   : > { %264 = vadd.xlane.f32.xlu0 %v263_v6 }
 0x179   : > { %v265_v15 = vpop.xlane.xlu0 %264 }
 0x17a   : > { %v266_v16 = vmul.f32 0.03125, %v265_v15 }
 0x17c   : > { %v267_v17 = vadd.f32 1e-05, %v266_v16 }
 0x17e   : > { %567 = vrsqrt.f32 %v267_v17 }
 0x188   : > { %v568_v18 = vpop.eup %567 }
 0x189   : > { %v269_v20 = vmul.f32 %v568_v18, %v261_v4 }
 0x18b   : > { %v277_v22 = vmul.f32 %v475_v19, %v269_v20 }
 0x18d   : > { %v285_v23 = vadd.f32 %v476_v21, %v277_v22 }
 0x18f   : > { %497 = vmatmul.mubr.msk.f32.vlgmr.msra.gmra.mrb[0].mxu0 %vm256_vm0, %v285_v23 }
 0x262   : > { %v366_v25 = vpop.f32.mrb[0].mxu0 }
 0x263   : > { %v367_v26 = vadd.f32 %v477_v24, %v366_v25  ;;  %v498_v27 = vpop.f32.mrb[1].mxu0 }
 0x265   : > { %370 = vst.msk [vmem:[%s254_s12] sm:$0xff] %vm256_vm0, %v367_v26 }
 0x266   : > { %640 = shalt.err (!%p637_p7)
}
 0x267   : > { %s641_s16 = scalar_lea.hbm %s905_s28, 128  ;;  %s645_s6 = scalar_lea.hbm %s955_s5, 256 }
 0x268   : > { %p642_p9 = scmp.ne.s32.totalorder %s905_s28, %s641_s16  ;;  %p646_p0 = scmp.lt.u32.totalorder %s905_s28, %s955_s5 }
 0x269   : > { %p647_p11 = scmp.lt.u32.totalorder %s645_s6, %s641_s16  ;;  %p649_p4 = scmp.lt.u32.totalorder %s641_s16, %s905_s28 }
 0x26a   : > { %p643_p2 = pnand %p642_p9, %p828_p12 }
 0x26b   : > { %p648_p1 = por %p647_p11, %p646_p0 }
 0x26c   : > { %p644_p5 = pneg %p643_p2 }
 0x26d   : > { %p650_p6 = por %p649_p4, %p648_p1 }
 0x26f   : > { %p651_p8 = pnand %p650_p6, %p644_p5 }
 0x271   : > { %654 = shalt.err (!%p651_p8)
}
 0x272   : > { %511 = dma.vmem_to_hbm [thread:$0]  (%p828_p12), %s907_s10, 128, %s905_s28, %s372_s23  }
 0x273 PF: > { %s397_s11 = sand.u32 1, %s685_s18   ;;  %p970_p10 = scmp.ne.s32.totalorder %s960_s25, 0 }
 0x274   : > { %p971_p13 = scmp.ge.s32.totalorder %s697_s21, 2  ;;  %s398_s12 = scalar_lea.sflag [#allocation4], %s397_s11 }
 0x276   : > { %p522_p3 = pnand %p971_p13, %p970_p10 }
 0x278   : > { %680 = dma.done.wait (!%p522_p3), %s398_s12, 128  }
 0x279   : > { %682 = vsyncadd (!%p522_p3), %s398_s12, 4294967168  ;;  %p19_p7 = scmp.ge.s32.totalorder %s793_s30, 4   ;;  %s972_s18 = smov %s689_s19 }
 0x27a   : > { %s973_s19 = smov %s693_s20  ;;  %s974_s20 = smov %s824_s8 }
 0x27b   : > { %s975_s21 = smov %s793_s30  ;;  %21 = sbr.rel (!%p19_p7) target bundleno = 6 (0x6), region = 89 }
 0x282   :  { %403 = vsyncpa [#allocation3], 1 }
 0x283   :  { %405 = vsyncpa [#allocation3 + $0x1], 1 }
 0x284   :  { %406 = vsyncpa [#allocation6], 1 }
 0x285   :  { %407 = vsyncpa [#allocation4], 1 }
 0x286   :  { %409 = vsyncpa [#allocation4 + $0x1], 1 }

</bundles_post_ra>
